<compile_context>
chip_gen: v7x
topology: tpu7x:2x2x1
jax: 0.10.0
libtpu: 0.0.40
codegen_flags: <defaults>
</compile_context>

<pallas_src>
import functools

import jax
import jax.numpy as jnp
from jax.experimental import pallas as pl
from jax.experimental.pallas import tpu as pltpu

HIDDEN_PAD = 128  # padded hidden width (lane-dense compute)
OUT_STORE = 8     # lanes actually written to HBM (>= action_size)


def _round_up(x, m):
    return ((x + m - 1) // m) * m


def dqn_kernel(x_ref, w1_ref, w2_ref, w3_ref, b1_ref, q_ref):
    # x_ref: (TB, S) f32; w1: (S, 128) bf16; w2/w3: (128, 128) bf16 with the
    # layer-2/3 biases folded into row 127; b1: (1, 128) f32 with lane 127 = 1
    # (constant-1 channel that carries the folded biases forward);
    # q_ref: (TB, OUT_STORE) f32.
    x = x_ref[...].astype(jnp.bfloat16)

    h1 = jnp.dot(x, w1_ref[...], preferred_element_type=jnp.float32) + b1_ref[...]
    h1 = jnp.maximum(h1, 0.0)                       # lane 127 == 1.0

    h2 = jnp.dot(h1.astype(jnp.bfloat16), w2_ref[...],
                 preferred_element_type=jnp.float32)  # bias b2 via row 127
    h2 = jnp.maximum(h2, 0.0)                       # lane 127 == 1.0

    q = jnp.dot(h2.astype(jnp.bfloat16), w3_ref[...],
                preferred_element_type=jnp.float32)   # bias b3 via row 127

    # Store only the first OUT_STORE lanes (real action columns + a little
    # padding); the wrapper slices down to action_size.
    q_ref[...] = q[:, :OUT_STORE].astype(q_ref.dtype)


def pack_params(params):
    """Pack the PyTorch-layout params into lane-dense, MXU-friendly arrays.

    Weights are zero-padded to 128 lanes and cast to bf16.  The layer-1 bias
    stays f32 with lane 127 set to 1.0 (constant-1 channel); the layer-2 and
    layer-3 biases are folded into row 127 of their (padded) weight matrices.
    """
    w1, b1, w2, b2, w3, b3 = params
    s, h = w1.shape
    a = w3.shape[1]
    last = HIDDEN_PAD - 1

    w1p = (jnp.zeros((s, HIDDEN_PAD), jnp.bfloat16)
           .at[:, :h].set(w1.astype(jnp.bfloat16)))

    b1p = (jnp.zeros((1, HIDDEN_PAD), jnp.float32)
           .at[0, :h].set(b1)
           .at[0, last].set(1.0))

    w2p = (jnp.zeros((HIDDEN_PAD, HIDDEN_PAD), jnp.bfloat16)
           .at[:h, :h].set(w2.astype(jnp.bfloat16))
           .at[last, :h].set(b2.astype(jnp.bfloat16))
           .at[last, last].set(1.0))     # carry the constant-1 lane forward

    w3p = (jnp.zeros((HIDDEN_PAD, HIDDEN_PAD), jnp.bfloat16)
           .at[:h, :a].set(w3.astype(jnp.bfloat16))
           .at[last, :a].set(b3.astype(jnp.bfloat16)))

    return w1p, w2p, w3p, b1p


@functools.partial(jax.jit, static_argnames=("action_size", "block_b"))
def dqn_forward(x, packed_params, *, action_size, block_b=2048):
    assert action_size <= OUT_STORE
    w1p, w2p, w3p, b1p = packed_params
    batch, state_size = x.shape

    # Tiling over the batch axis:
    #  * tb must be a multiple of 8 (sublane constraint);
    #  * choose the number of grid steps first, then size tb to the batch, so
    #    padding is at most a handful of rows (not a whole tile);
    #  * force >= 2 steps when there's enough work so the "parallel" grid axis
    #    can be split across v7x's two TensorCores.
    block_b = _round_up(max(block_b, 8), 8)
    b8 = _round_up(batch, 8)
    n_steps = pl.cdiv(b8, block_b)
    if b8 >= 16:
        n_steps = max(n_steps, 2)
    tb = _round_up(pl.cdiv(b8, n_steps), 8)
    b_pad = n_steps * tb
    if b_pad != batch:
        x = jnp.pad(x, ((0, b_pad - batch), (0, 0)))

    flops = 2 * b_pad * (state_size * HIDDEN_PAD
                         + HIDDEN_PAD * HIDDEN_PAD
                         + HIDDEN_PAD * HIDDEN_PAD)
    bytes_accessed = (4 * b_pad * state_size                 # x (f32 in)
                      + 2 * state_size * HIDDEN_PAD          # w1 (bf16)
                      + 2 * 2 * HIDDEN_PAD * HIDDEN_PAD      # w2, w3 (bf16)
                      + 4 * HIDDEN_PAD                       # b1 (f32)
                      + 4 * b_pad * OUT_STORE)               # narrow output

    vmem = pltpu.MemorySpace.VMEM
    q_padded = pl.pallas_call(
        dqn_kernel,
        out_shape=jax.ShapeDtypeStruct((b_pad, OUT_STORE), jnp.float32),
        grid=(n_steps,),
        in_specs=[
            # x streams tile-by-tile over the batch grid axis.
            pl.BlockSpec((tb, state_size), lambda i: (i, 0), memory_space=vmem),
            # Weights / bias: same block every step -> VMEM-resident.
            pl.BlockSpec(w1p.shape, lambda i: (0, 0), memory_space=vmem),
            pl.BlockSpec(w2p.shape, lambda i: (0, 0), memory_space=vmem),
            pl.BlockSpec(w3p.shape, lambda i: (0, 0), memory_space=vmem),
            pl.BlockSpec(b1p.shape, lambda i: (0, 0), memory_space=vmem),
        ],
        out_specs=pl.BlockSpec((tb, OUT_STORE), lambda i: (i, 0),
                               memory_space=vmem),
        compiler_params=pltpu.CompilerParams(
            dimension_semantics=("parallel",),
        ),
        cost_estimate=pl.CostEstimate(
            flops=flops, transcendentals=0, bytes_accessed=bytes_accessed
        ),
    )(x, w1p, w2p, w3p, b1p)

    # Slice away batch padding and the padded action lanes (tiny array now).
    return q_padded[:batch, :action_size]


def init_dqn_params(key, state_size, action_size):
    """Deterministic init mirroring nn.Linear defaults + the fc_out weight override."""
    k1, k2, k3, k4, k5, k6 = jax.random.split(key, 6)

    # fc1: Linear(state_size, 24): U(-1/sqrt(fan_in), 1/sqrt(fan_in))
    bound1 = 1.0 / jnp.sqrt(jnp.float32(state_size))
    w1 = jax.random.uniform(k1, (state_size, 24), jnp.float32, -bound1, bound1)
    b1 = jax.random.uniform(k2, (24,), jnp.float32, -bound1, bound1)

    # fc2: Linear(24, 24)
    bound2 = 1.0 / jnp.sqrt(jnp.float32(24))
    w2 = jax.random.uniform(k3, (24, 24), jnp.float32, -bound2, bound2)
    b2 = jax.random.uniform(k4, (24,), jnp.float32, -bound2, bound2)

    # fc_out: Linear(24, action_size); weight overridden with U(-0.001, 0.001),
    # bias keeps the default Linear init.
    w3 = jax.random.uniform(k5, (24, action_size), jnp.float32, -0.001, 0.001)
    b3 = jax.random.uniform(k6, (action_size,), jnp.float32, -bound2, bound2)

    return (w1, b1, w2, b2, w3, b3)


def dqn_reference(x, params):
    w1, b1, w2, b2, w3, b3 = params
    h1 = jnp.maximum(x @ w1 + b1, 0.0)
    h2 = jnp.maximum(h1 @ w2 + b2, 0.0)
    return h2 @ w3 + b3


if __name__ == "__main__":
    # CartPole sizes: state_size=4, action_size=2; replay-style batch so the
    # batch grid actually has 2 steps (n_steps >= 2 -> tb = 128).
    batch, state_size, action_size = 256, 4, 2

    key = jax.random.PRNGKey(0)
    kx, kp = jax.random.split(key)
    x = jax.random.normal(kx, (batch, state_size), jnp.float32)
    params = init_dqn_params(kp, state_size, action_size)
    packed = pack_params(params)

    q = dqn_forward(x, packed, action_size=action_size)
    q = jax.block_until_ready(q)

    q_ref = dqn_reference(x, params)
    assert q.shape == (batch, action_size)
    # bf16 matmul operands -> not bit-exact vs. the f32 reference.
    assert jnp.allclose(q, q_ref, atol=1e-2, rtol=2e-2), "mismatch vs reference"

    print("KERNEL_OK")
</pallas_src>

<mosaic_0001>
module attributes {stable_mosaic.version = 11 : i64} {
  func.func @dqn_kernel(%arg0: i32, %arg1: memref<128x4xf32, #tpu.memory_space<vmem>>, %arg2: memref<4x128xbf16, #tpu.memory_space<vmem>>, %arg3: memref<128x128xbf16, #tpu.memory_space<vmem>>, %arg4: memref<128x128xbf16, #tpu.memory_space<vmem>>, %arg5: memref<1x128xf32, #tpu.memory_space<vmem>>, %arg6: memref<128x8xf32, #tpu.memory_space<vmem>>) attributes {dimension_semantics = [#tpu.dimension_semantics<parallel>], iteration_bounds = array<i64: 2>, scalar_prefetch = 0 : i64, scratch_operands = 0 : i64, tpu.core_type = #tpu.core_type<tc>, window_params = [{transform_indices = @transform_0, window_bounds = array<i64: 128, 4>}, {pipeline_mode = #tpu.pipeline_mode<synchronous>, transform_indices = @transform_1, window_bounds = array<i64: 4, 128>}, {pipeline_mode = #tpu.pipeline_mode<synchronous>, transform_indices = @transform_2, window_bounds = array<i64: 128, 128>}, {pipeline_mode = #tpu.pipeline_mode<synchronous>, transform_indices = @transform_3, window_bounds = array<i64: 128, 128>}, {pipeline_mode = #tpu.pipeline_mode<synchronous>, transform_indices = @transform_4, window_bounds = array<i64: 1, 128>}, {transform_indices = @transform_5, window_bounds = array<i64: 128, 8>}]} {
    %c0 = arith.constant 0 : index
    %c0_0 = arith.constant 0 : index
    %0 = vector.load %arg1[%c0, %c0_0] : memref<128x4xf32, #tpu.memory_space<vmem>>, vector<128x4xf32>
    %1 = arith.truncf %0 : vector<128x4xf32> to vector<128x4xbf16>
    %c0_1 = arith.constant 0 : index
    %c0_2 = arith.constant 0 : index
    %2 = vector.load %arg2[%c0_1, %c0_2] : memref<4x128xbf16, #tpu.memory_space<vmem>>, vector<4x128xbf16>
    %cst = arith.constant dense<0.000000e+00> : vector<128x128xf32>
    %3 = tpu.matmul %1, %2, %cst {dimension_numbers = #tpu.dot_dimension_numbers<[1], [0], [0], [1], [0, 0, 1, 1], [], []>} : vector<128x4xbf16>, vector<4x128xbf16>, vector<128x128xf32> -> vector<128x128xf32>
    %c0_3 = arith.constant 0 : index
    %c0_4 = arith.constant 0 : index
    %4 = vector.load %arg5[%c0_3, %c0_4] : memref<1x128xf32, #tpu.memory_space<vmem>>, vector<1x128xf32>
    %5 = vector.broadcast %4 : vector<1x128xf32> to vector<128x128xf32>
    %6 = arith.addf %3, %5 : vector<128x128xf32>
    %cst_5 = arith.constant 0.000000e+00 : f32
    %7 = vector.broadcast %cst_5 : f32 to vector<128x128xf32>
    %8 = arith.maximumf %6, %7 : vector<128x128xf32>
    %9 = arith.truncf %8 : vector<128x128xf32> to vector<128x128xbf16>
    %c0_6 = arith.constant 0 : index
    %c0_7 = arith.constant 0 : index
    %10 = vector.load %arg3[%c0_6, %c0_7] : memref<128x128xbf16, #tpu.memory_space<vmem>>, vector<128x128xbf16>
    %cst_8 = arith.constant dense<0.000000e+00> : vector<128x128xf32>
    %11 = tpu.matmul %9, %10, %cst_8 {dimension_numbers = #tpu.dot_dimension_numbers<[1], [0], [0], [1], [0, 0, 1, 1], [], []>} : vector<128x128xbf16>, vector<128x128xbf16>, vector<128x128xf32> -> vector<128x128xf32>
    %cst_9 = arith.constant 0.000000e+00 : f32
    %12 = vector.broadcast %cst_9 : f32 to vector<128x128xf32>
    %13 = arith.maximumf %11, %12 : vector<128x128xf32>
    %14 = arith.truncf %13 : vector<128x128xf32> to vector<128x128xbf16>
    %c0_10 = arith.constant 0 : index
    %c0_11 = arith.constant 0 : index
    %15 = vector.load %arg4[%c0_10, %c0_11] : memref<128x128xbf16, #tpu.memory_space<vmem>>, vector<128x128xbf16>
    %cst_12 = arith.constant dense<0.000000e+00> : vector<128x128xf32>
    %16 = tpu.matmul %14, %15, %cst_12 {dimension_numbers = #tpu.dot_dimension_numbers<[1], [0], [0], [1], [0, 0, 1, 1], [], []>} : vector<128x128xbf16>, vector<128x128xbf16>, vector<128x128xf32> -> vector<128x128xf32>
    %17 = vector.extract_strided_slice %16 {offsets = [0, 0], sizes = [128, 8], strides = [1, 1]} : vector<128x128xf32> to vector<128x8xf32>
    %c0_13 = arith.constant 0 : index
    %c0_14 = arith.constant 0 : index
    %18 = vector.load %arg6[%c0_13, %c0_14] : memref<128x8xf32, #tpu.memory_space<vmem>>, vector<128x8xf32>
    tpu.vector_store %arg6[%c0_13, %c0_14], %17 {strides = array<i32>} : memref<128x8xf32, #tpu.memory_space<vmem>>, vector<128x8xf32>,
    return
  }
  func.func @transform_0(%arg0: i32) -> (i32, i32) {
    %c0_i32 = arith.constant 0 : i32
    %c0_i32_0 = arith.constant 0 : i32
    return %arg0, %c0_i32 : i32, i32
  }
  func.func @transform_1(%arg0: i32) -> (i32, i32) {
    %c0_i32 = arith.constant 0 : i32
    %c0_i32_0 = arith.constant 0 : i32
    %c0_i32_1 = arith.constant 0 : i32
    return %c0_i32, %c0_i32_0 : i32, i32
  }
  func.func @transform_2(%arg0: i32) -> (i32, i32) {
    %c0_i32 = arith.constant 0 : i32
    %c0_i32_0 = arith.constant 0 : i32
    %c0_i32_1 = arith.constant 0 : i32
    return %c0_i32, %c0_i32_0 : i32, i32
  }
  func.func @transform_3(%arg0: i32) -> (i32, i32) {
    %c0_i32 = arith.constant 0 : i32
    %c0_i32_0 = arith.constant 0 : i32
    %c0_i32_1 = arith.constant 0 : i32
    return %c0_i32, %c0_i32_0 : i32, i32
  }
  func.func @transform_4(%arg0: i32) -> (i32, i32) {
    %c0_i32 = arith.constant 0 : i32
    %c0_i32_0 = arith.constant 0 : i32
    %c0_i32_1 = arith.constant 0 : i32
    return %c0_i32, %c0_i32_0 : i32, i32
  }
  func.func @transform_5(%arg0: i32) -> (i32, i32) {
    %c0_i32 = arith.constant 0 : i32
    %c0_i32_0 = arith.constant 0 : i32
    return %arg0, %c0_i32 : i32, i32
  }
}

</mosaic_0001>

<bundles_post_ra>
// kernel: dqn_forward.1
= control target key start
LH: loop header
LB: loop body
LE: loop exit
PB: predicated region body
PF: predicated region fallthrough
CT: control target
= control target key end

     0   :  { %s1052_s18 = smov 0   ;;  %s1190_s0 = inlined_call_operand.vmem [shape: f32[256,4], index: 0, kind: input, shape index: {}]   ;;  %s1191_s1 = inlined_call_operand.vmem [shape: bf16[4,128], index: 1, kind: input, shape index: {}]   ;;  %s1192_s2 = inlined_call_operand.vmem [shape: bf16[128,128], index: 2, kind: input, shape index: {}]   ;;  %s1193_s3 = inlined_call_operand.vmem [shape: bf16[128,128], index: 3, kind: input, shape index: {}]   ;;  %s1194_s4 = inlined_call_operand.vmem [shape: f32[1,128], index: 4, kind: input, shape index: {}]   ;;  %s1195_s5 = inlined_call_operand.vmem [shape: f32[256,8], index: 5, kind: output, shape index: {}]  }
   0x1 LB: > { %s830_s19 = sadd.s32 4294967295, %s1020_s18   ;;  %p834_p0 = scmp.ge.s32.totalorder %s1020_s18, 1  ;;  %s1020_s18 = sphi %s1052_s18, %s15_s18  }
   0x2   : > { %p188_p1 = scmp.lt.s32.totalorder %s1020_s18, 3 }
   0x4   : > { %p189_p2 = pnand %p834_p0, %p188_p1 }
   0x5   : > { %v253_v0 = vld [vmem:[%s1191_s1] sm:$0x3] (!%p189_p2)  ;;  %vm286_vm0 = vcmask (!%p189_p2), 1041408   ;;  %s835_s22 = sshll.u32 (!%p189_p2), %s830_s19, 4  ;;  %v999_v3 = vld [vmem:[%s1192_s2 + $0x8] sm:$0xff] (!%p189_p2)   ;;  %v1000_v4 = vld [vmem:[%s1192_s2 + $0x10] sm:$0xff] (!%p189_p2)  }
   0x6   : > { %192 = sbr.rel (%p189_p2) target bundleno = 702 (0x2be), region = 40  ;;  %v998_v1 = vld [vmem:[%s1192_s2] sm:$0xff] (!%p189_p2)   ;;  %989 = vmatprep.subr.msk.bf16.mxu0 (!%p189_p2), %vm286_vm0, %v253_v0  ;;  %v288_v2 = vsel (!%p189_p2), %vm286_vm0, %v253_v0, 0  ;;  %p217_p3 = scmp.lt.s32.totalorder (!%p189_p2), %s835_s22, 31  ;;  %v1001_v5 = vld [vmem:[%s1192_s2 + $0x18] sm:$0xff] (!%p189_p2)   ;;  %vm261_vm1 = vcmask (!%p189_p2), 31744  }
   0x7   : > { %908 = vmatpush3.bf16.msra.mxu0 (!%p189_p2), %v288_v2  ;;  %925 = vmatprep.subr.bf16.mxu1 (!%p189_p2), %v998_v1  ;;  %v1002_v15 = vld [vmem:[%s1192_s2 + $0x20] sm:$0xff] (!%p189_p2)   ;;  %v1003_v20 = vld [vmem:[%s1192_s2 + $0x28] sm:$0xff] (!%p189_p2)   ;;  %v1004_v32 = vld [vmem:[%s1192_s2 + $0x30] sm:$0xff] (!%p189_p2)   ;;  %vm757_vm2 = vcmask (!%p189_p2), 64512  }
   0x8   : > { %926 = vmatpush3.bf16.msra.mxu1 (!%p189_p2), %v998_v1  ;;  %v1005_v33 = vld [vmem:[%s1192_s2 + $0x38] sm:$0xff] (!%p189_p2)   ;;  %v1006_v34 = vld [vmem:[%s1193_s3] sm:$0xff] (!%p189_p2)   ;;  %v1007_v35 = vld [vmem:[%s1193_s3 + $0x8] sm:$0xff] (!%p189_p2)  }
   0x9   : > { %927 = vmatprep.subr.bf16.mxu1 (!%p189_p2), %v999_v3  ;;  %957 = vmatprep.subr.bf16.mxu0 (!%p189_p2), %v1006_v34  ;;  %v1008_v36 = vld [vmem:[%s1193_s3 + $0x10] sm:$0xff] (!%p189_p2)   ;;  %v1009_v37 = vld [vmem:[%s1193_s3 + $0x18] sm:$0xff] (!%p189_p2)   ;;  %v1010_v38 = vld [vmem:[%s1193_s3 + $0x20] sm:$0xff] (!%p189_p2)  }
   0xa   : > { %v1011_v39 = vld [vmem:[%s1193_s3 + $0x28] sm:$0xff] (!%p189_p2)   ;;  %v839_v40 = vld [vmem:[%s1194_s4] ss:$0 sm:$0xff] (!%p189_p2) }
   0xc   : > { %928 = vmatpush3.bf16.msra.mxu1 (!%p189_p2), %v999_v3 }
   0xd   : > { %s1197_s22 = smov (!%p217_p3, %s835_s22), 31  ;;  %929 = vmatprep.subr.bf16.mxu1 %v1000_v4 }
   0xe   : > { %s836_s29 = sshll.u32 %s1197_s22, 3 }
   0xf   : > { %s1080_s7 = scalar_lea.vmem %s1190_s0, %s836_s29  ;;  %s1153_s16 = scalar_lea.vmem %s1195_s5, %s836_s29 }
  0x10   : > { %v229_v6 = vld [vmem:[%s1080_s7] sm:$0xff]  ;;  %v230_v7 = vld [vmem:[%s1080_s7 + $0x8] sm:$0xff]  ;;  %v231_v8 = vld [vmem:[%s1080_s7 + $0x10] sm:$0xff]  ;;  %930 = vmatpush3.bf16.msra.mxu1 %v1000_v4 }
  0x11   : > { %v245_v9 = vpack.c.bf16 %v230_v7, %v229_v6  ;;  %v232_v10 = vld [vmem:[%s1080_s7 + $0x18] sm:$0xff]  ;;  %v233_v11 = vld [vmem:[%s1080_s7 + $0x20] sm:$0xff]  ;;  %v234_v12 = vld [vmem:[%s1080_s7 + $0x28] sm:$0xff]  ;;  %931 = vmatprep.subr.bf16.mxu1 %v1001_v5 }
  0x12   : > { %v246_v13 = vpack.c.bf16 %v232_v10, %v231_v8  ;;  %v247_v14 = vpack.c.bf16 %v234_v12, %v233_v11  ;;  %v235_v16 = vld [vmem:[%s1080_s7 + $0x30] sm:$0xff]  ;;  %v236_v17 = vld [vmem:[%s1080_s7 + $0x38] sm:$0xff]  ;;  %v237_v18 = vld [vmem:[%s1080_s7 + $0x40] sm:$0xff] }
  0x13   : > { %909 = vmatprep.mubr.msk.bf16.mxu0 %vm261_vm1, %v245_v9  ;;  %v238_v19 = vld [vmem:[%s1080_s7 + $0x48] sm:$0xff]  ;;  %v248_v21 = vpack.c.bf16 %v236_v17, %v235_v16  ;;  %v239_v23 = vld [vmem:[%s1080_s7 + $0x50] sm:$0xff]  ;;  %v240_v24 = vld [vmem:[%s1080_s7 + $0x58] sm:$0xff] }
  0x14   : > { %910 = vmatmul.mubr.msk.bf16.vlgmr.msra.gmra.mrb[0].mxu0 %vm261_vm1, %v246_v13  ;;  %932 = vmatpush3.bf16.msra.mxu1 %v1001_v5  ;;  %v249_v22 = vpack.c.bf16 %v238_v19, %v237_v18  ;;  %v241_v25 = vld [vmem:[%s1080_s7 + $0x60] sm:$0xff]  ;;  %v242_v26 = vld [vmem:[%s1080_s7 + $0x68] sm:$0xff]  ;;  %v250_v27 = vpack.c.bf16 %v240_v24, %v239_v23  ;;  %v243_v29 = vld [vmem:[%s1080_s7 + $0x70] sm:$0xff] }
  0x15   : > { %913 = vmatprep.mubr.msk.bf16.mxu0 %vm261_vm1, %v247_v14  ;;  %933 = vmatprep.subr.bf16.mxu1 %v1002_v15  ;;  %v251_v28 = vpack.c.bf16 %v242_v26, %v241_v25  ;;  %v244_v30 = vld [vmem:[%s1080_s7 + $0x78] sm:$0xff] }
  0x16   : > { %v252_v31 = vpack.c.bf16 %v244_v30, %v243_v29  ;;  %958 = vmatpush3.bf16.msra.mxu0 %v1006_v34  ;;  %v1013_v34 = vld [vmem:[%s1193_s3 + $0x38] sm:$0xff]  }
  0x17   : > { %959 = vmatprep.subr.bf16.mxu0 %v1007_v35 }
  0x18   : > { %934 = vmatpush3.bf16.msra.mxu1 %v1002_v15 }
  0x19   : > { %935 = vmatprep.subr.bf16.mxu1 %v1003_v20 }
  0x1a   : > { %960 = vmatpush3.bf16.msra.mxu0 %v1007_v35 }
  0x1b   : > { %961 = vmatprep.subr.bf16.mxu0 %v1008_v36 }
  0x1c   : > { %914 = vmatmul.mubr.msk.bf16.gmra.mrb[4].mxu0 %vm261_vm1, %v248_v21  ;;  %936 = vmatpush3.bf16.msra.mxu1 %v1003_v20 }
  0x1d   : > { %917 = vmatprep.mubr.msk.bf16.mxu0 %vm261_vm1, %v249_v22  ;;  %937 = vmatprep.subr.bf16.mxu1 %v1004_v32 }
  0x1e   : > { %962 = vmatpush3.bf16.msra.mxu0 %v1008_v36 }
  0x1f   : > { %963 = vmatprep.subr.bf16.mxu0 %v1009_v37 }
  0x20   : > { %938 = vmatpush3.bf16.msra.mxu1 %v1004_v32 }
  0x21   : > { %939 = vmatprep.subr.bf16.mxu1 %v1005_v33 }
  0x22   : > { %964 = vmatpush3.bf16.msra.mxu0 %v1009_v37 }
  0x23   : > { %965 = vmatprep.subr.bf16.mxu0 %v1010_v38 }
  0x24   : > { %918 = vmatmul.mubr.msk.bf16.gmra.mrb[8].mxu0 %vm261_vm1, %v250_v27  ;;  %940 = vmatpush3.bf16.msra.mxu1 %v1005_v33  ;;  %v1012_v33 = vld [vmem:[%s1193_s3 + $0x30] sm:$0xff]  }
  0x25   : > { %921 = vmatprep.mubr.msk.bf16.mxu0 %vm261_vm1, %v251_v28 }
  0x26   : > { %966 = vmatpush3.bf16.msra.mxu0 %v1010_v38 }
  0x27   : > { %967 = vmatprep.subr.bf16.mxu0 %v1011_v39 }
  0x2a   : > { %968 = vmatpush3.bf16.msra.mxu0 %v1011_v39 }
  0x2b   : > { %969 = vmatprep.subr.bf16.mxu0 %v1012_v33 }
  0x2c   : > { %922 = vmatmul.mubr.msk.bf16.gmra.mrb[12].mxu0 %vm261_vm1, %v252_v31 }
  0x2e   : > { %970 = vmatpush3.bf16.msra.mxu0 %v1012_v33 }
  0x2f   : > { %971 = vmatprep.subr.bf16.mxu0 %v1013_v34 }
  0x32   : > { %972 = vmatpush3.bf16.msra.mxu0 %v1013_v34 }
  0xe7   : > { %v911_v41 = vpop.f32.mrb[0].mxu0 }
  0xe8   : > { %v333_v42 = vadd.f32 %v911_v41, %v839_v40  ;;  %v324_v43 = vpop.f32.mrb[1].mxu0 }
  0xe9   : > { %v325_v44 = vadd.f32 %v839_v40, %v324_v43  ;;  %v912_v45 = vpop.f32.mrb[2].mxu0 }
  0xea   : > { %v336_v46 = vadd.f32 %v912_v45, %v839_v40  ;;  %v327_v47 = vpop.f32.mrb[3].mxu0  ;;  %v389_v49 = vmax.f32 %v333_v42, 0.0 }
  0xeb   : > { %v328_v48 = vadd.f32 %v839_v40, %v327_v47  ;;  %v387_v51 = vmax.f32 %v325_v44, 0.0 }
  0xec   : > { %v390_v50 = vmax.f32 %v336_v46, 0.0 }
  0xed   : > { %v388_v52 = vmax.f32 %v328_v48, 0.0 }
  0xee   : > { %v404_v53 = vpack.c.bf16 %v390_v50, %v389_v49 }
  0xef   : > { %v915_v54 = vpop.f32.mrb[4].mxu0  ;;  %v403_v55 = vpack.c.bf16 %v388_v52, %v387_v51 }
  0xf0   : > { %v349_v56 = vadd.f32 %v915_v54, %v839_v40  ;;  %v340_v57 = vpop.f32.mrb[5].mxu0 }
  0xf1   : > { %v341_v58 = vadd.f32 %v839_v40, %v340_v57  ;;  %v916_v59 = vpop.f32.mrb[6].mxu0  ;;  %941 = vmatprep.mubr.bf16.mxu1 %v403_v55 }
  0xf2   : > { %v352_v60 = vadd.f32 %v916_v59, %v839_v40  ;;  %v343_v61 = vpop.f32.mrb[7].mxu0  ;;  %942 = vmatmul.mubr.bf16.vlgmr.msra.gmra.mrb[0].mxu1 %v404_v53  ;;  %v393_v63 = vmax.f32 %v349_v56, 0.0 }
  0xf3   : > { %v344_v62 = vadd.f32 %v839_v40, %v343_v61  ;;  %v391_v1 = vmax.f32 %v341_v58, 0.0 }
  0xf4   : > { %v394_v0 = vmax.f32 %v352_v60, 0.0 }
  0xf5   : > { %v392_v2 = vmax.f32 %v344_v62, 0.0 }
  0xf6   : > { %v406_v3 = vpack.c.bf16 %v394_v0, %v393_v63 }
  0xf7   : > { %v405_v4 = vpack.c.bf16 %v392_v2, %v391_v1  ;;  %v919_v5 = vpop.f32.mrb[8].mxu0 }
  0xf8   : > { %v365_v6 = vadd.f32 %v919_v5, %v839_v40  ;;  %v356_v7 = vpop.f32.mrb[9].mxu0 }
  0xf9   : > { %v357_v8 = vadd.f32 %v839_v40, %v356_v7  ;;  %v920_v9 = vpop.f32.mrb[10].mxu0  ;;  %945 = vmatprep.mubr.bf16.mxu1 %v405_v4 }
  0xfa   : > { %v368_v10 = vadd.f32 %v920_v9, %v839_v40  ;;  %v359_v11 = vpop.f32.mrb[11].mxu0  ;;  %946 = vmatmul.mubr.bf16.gmra.mrb[4].mxu1 %v406_v3  ;;  %v397_v13 = vmax.f32 %v365_v6, 0.0 }
  0xfb   : > { %v360_v12 = vadd.f32 %v839_v40, %v359_v11  ;;  %v395_v15 = vmax.f32 %v357_v8, 0.0 }
  0xfc   : > { %v398_v14 = vmax.f32 %v368_v10, 0.0 }
  0xfd   : > { %v396_v16 = vmax.f32 %v360_v12, 0.0 }
  0xfe   : > { %v408_v17 = vpack.c.bf16 %v398_v14, %v397_v13 }
  0xff   : > { %v407_v18 = vpack.c.bf16 %v396_v16, %v395_v15  ;;  %v923_v19 = vpop.f32.mrb[12].mxu0 }
 0x100   : > { %v381_v20 = vadd.f32 %v923_v19, %v839_v40  ;;  %v372_v21 = vpop.f32.mrb[13].mxu0 }
 0x101   : > { %v373_v22 = vadd.f32 %v839_v40, %v372_v21  ;;  %v924_v23 = vpop.f32.mrb[14].mxu0  ;;  %949 = vmatprep.mubr.bf16.mxu1 %v407_v18 }
 0x102   : > { %v384_v24 = vadd.f32 %v924_v23, %v839_v40  ;;  %v375_v25 = vpop.f32.mrb[15].mxu0  ;;  %950 = vmatmul.mubr.bf16.gmra.mrb[8].mxu1 %v408_v17  ;;  %v401_v27 = vmax.f32 %v381_v20, 0.0 }
 0x103   : > { %v376_v26 = vadd.f32 %v839_v40, %v375_v25  ;;  %v399_v29 = vmax.f32 %v373_v22, 0.0 }
 0x104   : > { %v402_v28 = vmax.f32 %v384_v24, 0.0 }
 0x105   : > { %v400_v30 = vmax.f32 %v376_v26, 0.0 }
 0x106   : > { %v410_v31 = vpack.c.bf16 %v402_v28, %v401_v27 }
 0x107   : > { %v409_v32 = vpack.c.bf16 %v400_v30, %v399_v29 }
 0x109   : > { %953 = vmatprep.mubr.bf16.mxu1 %v409_v32 }
 0x10a   : > { %954 = vmatmul.mubr.bf16.gmra.mrb[12].mxu1 %v410_v31 }
 0x1c5   : > { %v943_v35 = vpop.f32.mrb[0].mxu1 }
 0x1c6   : > { %v509_v36 = vpop.f32.mrb[1].mxu1  ;;  %v574_v38 = vmax.f32 %v943_v35, 0.0 }
 0x1c7   : > { %v944_v37 = vpop.f32.mrb[2].mxu1  ;;  %v572_v41 = vmax.f32 %v509_v36, 0.0 }
 0x1c8   : > { %v575_v39 = vmax.f32 %v944_v37, 0.0  ;;  %v512_v40 = vpop.f32.mrb[3].mxu1 }
 0x1c9   : > { %v573_v42 = vmax.f32 %v512_v40, 0.0 }
 0x1ca   : > { %v589_v43 = vpack.c.bf16 %v575_v39, %v574_v38 }
 0x1cb   : > { %v588_v44 = vpack.c.bf16 %v573_v42, %v572_v41 }
 0x1cd   : > { %v947_v45 = vpop.f32.mrb[4].mxu1  ;;  %973 = vmatprep.mubr.bf16.mxu0 %v588_v44 }
 0x1ce   : > { %v525_v46 = vpop.f32.mrb[5].mxu1  ;;  %974 = vmatmul.mubr.bf16.vlgmr.msra.gmra.mrb[16].mxu0 %v589_v43  ;;  %v578_v48 = vmax.f32 %v947_v45, 0.0 }
 0x1cf   : > { %v948_v47 = vpop.f32.mrb[6].mxu1  ;;  %v576_v51 = vmax.f32 %v525_v46, 0.0 }
 0x1d0   : > { %v579_v49 = vmax.f32 %v948_v47, 0.0  ;;  %v528_v50 = vpop.f32.mrb[7].mxu1 }
 0x1d1   : > { %v577_v52 = vmax.f32 %v528_v50, 0.0 }
 0x1d2   : > { %v591_v53 = vpack.c.bf16 %v579_v49, %v578_v48 }
 0x1d3   : > { %v590_v54 = vpack.c.bf16 %v577_v52, %v576_v51 }
 0x1d5   : > { %v951_v55 = vpop.f32.mrb[8].mxu1  ;;  %977 = vmatprep.mubr.bf16.mxu0 %v590_v54 }
 0x1d6   : > { %v541_v56 = vpop.f32.mrb[9].mxu1  ;;  %978 = vmatmul.mubr.bf16.gmra.mrb[20].mxu0 %v591_v53  ;;  %v582_v58 = vmax.f32 %v951_v55, 0.0 }
 0x1d7   : > { %v952_v57 = vpop.f32.mrb[10].mxu1  ;;  %v580_v61 = vmax.f32 %v541_v56, 0.0 }
 0x1d8   : > { %v583_v59 = vmax.f32 %v952_v57, 0.0  ;;  %v544_v60 = vpop.f32.mrb[11].mxu1 }
 0x1d9   : > { %v581_v62 = vmax.f32 %v544_v60, 0.0 }
 0x1da   : > { %v593_v63 = vpack.c.bf16 %v583_v59, %v582_v58 }
 0x1db   : > { %v592_v0 = vpack.c.bf16 %v581_v62, %v580_v61 }
 0x1dd   : > { %v955_v1 = vpop.f32.mrb[12].mxu1  ;;  %981 = vmatprep.mubr.bf16.mxu0 %v592_v0 }
 0x1de   : > { %v557_v2 = vpop.f32.mrb[13].mxu1  ;;  %982 = vmatmul.mubr.bf16.gmra.mrb[24].mxu0 %v593_v63  ;;  %v586_v4 = vmax.f32 %v955_v1, 0.0 }
 0x1df   : > { %v956_v3 = vpop.f32.mrb[14].mxu1  ;;  %v584_v7 = vmax.f32 %v557_v2, 0.0 }
 0x1e0   : > { %v587_v5 = vmax.f32 %v956_v3, 0.0  ;;  %v560_v6 = vpop.f32.mrb[15].mxu1 }
 0x1e1   : > { %v585_v8 = vmax.f32 %v560_v6, 0.0 }
 0x1e2   : > { %v595_v9 = vpack.c.bf16 %v587_v5, %v586_v4 }
 0x1e3   : > { %v594_v10 = vpack.c.bf16 %v585_v8, %v584_v7 }
 0x1e5   : > { %985 = vmatprep.mubr.bf16.mxu0 %v594_v10 }
 0x1e6   : > { %986 = vmatmul.mubr.bf16.gmra.mrb[28].mxu0 %v595_v9 }
 0x2a1   : > { %v975_v11 = vpop.f32.mrb[16].mxu0 }
 0x2a2   : > { %760 = vst.msk [vmem:[%s1153_s16 + $0x10] sm:$0xff] %vm757_vm2, %v975_v11  ;;  %v694_v12 = vpop.f32.mrb[17].mxu0 }
 0x2a3   : > { %758 = vst.msk [vmem:[%s1153_s16] sm:$0xff] %vm757_vm2, %v694_v12  ;;  %v976_v13 = vpop.f32.mrb[18].mxu0 }
 0x2a4   : > { %761 = vst.msk [vmem:[%s1153_s16 + $0x18] sm:$0xff] %vm757_vm2, %v976_v13  ;;  %v697_v14 = vpop.f32.mrb[19].mxu0 }
 0x2a5   : > { %759 = vst.msk [vmem:[%s1153_s16 + $0x8] sm:$0xff] %vm757_vm2, %v697_v14 }
 0x2a9   : > { %v979_v15 = vpop.f32.mrb[20].mxu0 }
 0x2aa   : > { %764 = vst.msk [vmem:[%s1153_s16 + $0x30] sm:$0xff] %vm757_vm2, %v979_v15  ;;  %v710_v16 = vpop.f32.mrb[21].mxu0 }
 0x2ab   : > { %762 = vst.msk [vmem:[%s1153_s16 + $0x20] sm:$0xff] %vm757_vm2, %v710_v16  ;;  %v980_v17 = vpop.f32.mrb[22].mxu0 }
 0x2ac   : > { %765 = vst.msk [vmem:[%s1153_s16 + $0x38] sm:$0xff] %vm757_vm2, %v980_v17  ;;  %v713_v18 = vpop.f32.mrb[23].mxu0 }
 0x2ad   : > { %763 = vst.msk [vmem:[%s1153_s16 + $0x28] sm:$0xff] %vm757_vm2, %v713_v18 }
 0x2b1   : > { %v983_v19 = vpop.f32.mrb[24].mxu0 }
 0x2b2   : > { %768 = vst.msk [vmem:[%s1153_s16 + $0x50] sm:$0xff] %vm757_vm2, %v983_v19  ;;  %v726_v20 = vpop.f32.mrb[25].mxu0 }
 0x2b3   : > { %766 = vst.msk [vmem:[%s1153_s16 + $0x40] sm:$0xff] %vm757_vm2, %v726_v20  ;;  %v984_v21 = vpop.f32.mrb[26].mxu0 }
 0x2b4   : > { %769 = vst.msk [vmem:[%s1153_s16 + $0x58] sm:$0xff] %vm757_vm2, %v984_v21  ;;  %v729_v22 = vpop.f32.mrb[27].mxu0 }
 0x2b5   : > { %767 = vst.msk [vmem:[%s1153_s16 + $0x48] sm:$0xff] %vm757_vm2, %v729_v22 }
 0x2b9   : > { %v987_v23 = vpop.f32.mrb[28].mxu0 }
 0x2ba   : > { %772 = vst.msk [vmem:[%s1153_s16 + $0x70] sm:$0xff] %vm757_vm2, %v987_v23  ;;  %v742_v24 = vpop.f32.mrb[29].mxu0 }
 0x2bb   : > { %770 = vst.msk [vmem:[%s1153_s16 + $0x60] sm:$0xff] %vm757_vm2, %v742_v24  ;;  %v988_v25 = vpop.f32.mrb[30].mxu0 }
 0x2bc   : > { %773 = vst.msk [vmem:[%s1153_s16 + $0x78] sm:$0xff] %vm757_vm2, %v988_v25  ;;  %v745_v26 = vpop.f32.mrb[31].mxu0 }
 0x2bd   : > { %771 = vst.msk [vmem:[%s1153_s16 + $0x68] sm:$0xff] %vm757_vm2, %v745_v26 }
 0x2be PF: > { %s15_s18 = sadd.s32 1, %s1020_s18  }
 0x2bf   : > { %p12_p4 = scmp.ge.s32.totalorder %s15_s18, 4  }
 0x2c1   :  { %14 = sbr.rel (!%p12_p4) target bundleno = 1 (0x1), region = 70 }

</bundles_post_ra>
